<compile_context>
chip_gen: v7x
topology: tpu7x:2x2x1
jax: 0.10.0
libtpu: 0.0.40
codegen_flags: <defaults>
</compile_context>

<pallas_src>
import jax
import jax.numpy as jnp
from jax.experimental import pallas as pl
from jax.experimental.pallas import tpu as pltpu


# ------------------------------ kernels --------------------------------------

def fc12_kernel(x_ref, w1_ref, b1_ref, w2_ref, b2_ref, h_ref):
    # bf16 MXU inputs, f32 accumulate; biases stay f32 (VPU add).
    h1 = jnp.dot(x_ref[...], w1_ref[...], preferred_element_type=jnp.float32)
    h1 = h1 + b1_ref[...]
    h2 = jnp.dot(h1.astype(jnp.bfloat16), w2_ref[...],
                 preferred_element_type=jnp.float32)
    h2 = h2 + b2_ref[...]
    h_ref[...] = h2.astype(h_ref.dtype)


def fc3_softmax_kernel(h_ref, w3_ref, b3_ref, o_ref):
    # fc3 for this grid step's N tile only (f32 accumulate on the MXU).
    logits = jnp.dot(h_ref[...], w3_ref[...], preferred_element_type=jnp.float32)
    logits = logits + b3_ref[...]
    # softmax over dim 0 (batch axis) — independent per output column, so the
    # N-tiled grid needs no cross-tile reduction. Numerically stable.
    m = jnp.max(logits, axis=0, keepdims=True)
    e = jnp.exp(logits - m)
    denom = jnp.sum(e, axis=0, keepdims=True)
    r = pl.reciprocal(denom, approx=True)      # EUP slot, nearly free
    r = r * (2.0 - denom * r)                  # one Newton step -> ~exact normalization
    o_ref[...] = e * r


# ------------------------------ helpers --------------------------------------

def _round_up(n, m):
    return ((n + m - 1) // m) * m


def _pad2(a, rows, cols):
    return jnp.pad(a, ((0, rows - a.shape[0]), (0, cols - a.shape[1])))


def _vmem_limit(nbytes):
    # Derived from actual block sizes; cap at 48 MiB (safe on v5e/v6e/v7x).
    return int(min(max(nbytes, 4 * 1024 * 1024), 48 * 1024 * 1024))


def init_params(key, input_size, hidden_dim1, hidden_dim2, target_size):
    """PyTorch-like uniform fan-in init. Weights stored (in, out) so kernel does x @ W."""
    keys = jax.random.split(key, 6)

    def linear(kw, kb, fan_in, fan_out):
        bound = 1.0 / jnp.sqrt(fan_in)
        w = jax.random.uniform(kw, (fan_in, fan_out), jnp.float32, -bound, bound)
        b = jax.random.uniform(kb, (1, fan_out), jnp.float32, -bound, bound)
        return w, b

    w1, b1 = linear(keys[0], keys[1], input_size, hidden_dim1)
    w2, b2 = linear(keys[2], keys[3], hidden_dim1, hidden_dim2)
    w3, b3 = linear(keys[4], keys[5], hidden_dim2, target_size)
    return dict(w1=w1, b1=b1, w2=w2, b2=b2, w3=w3, b3=b3)


def prepare_params(params, *, tile_n=256):
    """One-time padding (lane-dense multiples of 128) + bf16 cast of the weights.

    Zero-padding is exact: padded input/hidden columns are identically zero and
    padded target columns are sliced off after the kernel.
    """
    d_in, h1 = params["w1"].shape
    h2 = params["w2"].shape[1]
    tgt = params["w3"].shape[1]

    K = _round_up(d_in, 128)
    H1 = _round_up(h1, 128)
    H2 = _round_up(h2, 128)
    n128 = _round_up(tgt, 128)
    tn = min(tile_n, n128)            # don't over-pad tiny models to a 256 tile
    N = _round_up(n128, tn)

    return dict(
        w1=_pad2(params["w1"], K, H1).astype(jnp.bfloat16),
        b1=_pad2(params["b1"], 1, H1),                      # biases stay f32
        w2=_pad2(params["w2"], H1, H2).astype(jnp.bfloat16),
        b2=_pad2(params["b2"], 1, H2),
        w3=_pad2(params["w3"], H2, N).astype(jnp.bfloat16),
        b3=_pad2(params["b3"], 1, N),
        K=K, H1=H1, H2=H2, N=N, tile_n=tn, target_size=tgt,
    )


# ------------------------------ forward --------------------------------------

def model_forward(x, prepared):
    """x: (B, input_size) f32. prepared: output of prepare_params()."""
    B = x.shape[0]                    # NEVER pad B: softmax is over dim 0
    p = prepared
    K, H1, H2, N, tn, tgt = (p[k] for k in ("K", "H1", "H2", "N", "tile_n", "target_size"))

    # Only x is padded per call (weights were padded/cast once in prepare_params).
    xp = jnp.pad(x, ((0, 0), (0, K - x.shape[1]))).astype(jnp.bfloat16)

    # ---------------- kernel A: fc1 -> fc2 (single invocation) ----------------
    bytes_a = 2 * (B * K + K * H1 + H1 * H2 + B * H2) + 4 * (H1 + H2)
    cost_a = pl.CostEstimate(
        flops=2 * B * (K * H1 + H1 * H2),
        transcendentals=0,
        bytes_accessed=bytes_a,
    )
    h = pl.pallas_call(
        fc12_kernel,
        out_shape=jax.ShapeDtypeStruct((B, H2), jnp.bfloat16),
        grid_spec=pltpu.PrefetchScalarGridSpec(
            num_scalar_prefetch=0,
            grid=(1,),
            in_specs=[
                pl.BlockSpec((B, K), lambda i: (0, 0)),     # x
                pl.BlockSpec((K, H1), lambda i: (0, 0)),    # w1 (bf16)
                pl.BlockSpec((1, H1), lambda i: (0, 0)),    # b1
                pl.BlockSpec((H1, H2), lambda i: (0, 0)),   # w2 (bf16)
                pl.BlockSpec((1, H2), lambda i: (0, 0)),    # b2
            ],
            out_specs=pl.BlockSpec((B, H2), lambda i: (0, 0)),
        ),
        compiler_params=pltpu.CompilerParams(
            dimension_semantics=("arbitrary",),
            vmem_limit_bytes=_vmem_limit(2 * bytes_a + (1 << 20)),
        ),
        cost_estimate=cost_a,
    )(xp, p["w1"], p["b1"], p["w2"], p["b2"])

    # ---------- kernel B: fc3 (N-tiled) + softmax over the batch axis ----------
    # Only resident operand is the tiny h block; w3/b3/out are streamed per tile.
    block_bytes = 2 * (B * H2 + H2 * tn) + 4 * (tn + B * tn)
    bytes_b = 2 * (B * H2 + H2 * N) + 4 * (N + B * N)
    cost_b = pl.CostEstimate(
        flops=2 * B * H2 * N,
        transcendentals=B * N + N,    # exp + reciprocal
        bytes_accessed=bytes_b,
    )
    out_padded = pl.pallas_call(
        fc3_softmax_kernel,
        out_shape=jax.ShapeDtypeStruct((B, N), jnp.float32),
        grid_spec=pltpu.PrefetchScalarGridSpec(
            num_scalar_prefetch=0,
            grid=(N // tn,),
            in_specs=[
                pl.BlockSpec((B, H2), lambda j: (0, 0)),    # h   (resident, tiny)
                pl.BlockSpec((H2, tn), lambda j: (0, j)),   # w3  (streamed, bf16)
                pl.BlockSpec((1, tn), lambda j: (0, j)),    # b3
            ],
            out_specs=pl.BlockSpec((B, tn), lambda j: (0, j)),
        ),
        compiler_params=pltpu.CompilerParams(
            dimension_semantics=("parallel",),              # independent N tiles -> megacore
            vmem_limit_bytes=_vmem_limit(2 * block_bytes + (1 << 20)),
        ),
        cost_estimate=cost_b,
    )(h, p["w3"], p["b3"])

    return out_padded[:, :tgt]


def reference_forward(x, params):
    h = x @ params["w1"] + params["b1"]
    h = h @ params["w2"] + params["b2"]
    h = h @ params["w3"] + params["b3"]
    return jax.nn.softmax(h, axis=0)


if __name__ == "__main__":
    key = jax.random.PRNGKey(0)
    k_x, k_p = jax.random.split(key)

    B = 8
    input_size, hidden_dim1, hidden_dim2, target_size = 32, 64, 32, 16

    x = jax.random.normal(k_x, (B, input_size), jnp.float32)
    params = init_params(k_p, input_size, hidden_dim1, hidden_dim2, target_size)
    prepared = prepare_params(params)     # padding/bf16 cast hoisted out of the forward

    out = jax.block_until_ready(model_forward(x, prepared))
    ref = reference_forward(x, params)

    assert out.shape == (B, target_size)
    # bf16 MXU inputs -> looser tolerance vs the f32 reference
    assert jnp.allclose(out, ref, atol=1e-2, rtol=1e-2), float(jnp.max(jnp.abs(out - ref)))

    print("KERNEL_OK")
</pallas_src>

<mosaic_0001>
module attributes {stable_mosaic.version = 11 : i64} {
  func.func @fc12_kernel(%arg0: i32, %arg1: memref<8x128xbf16, #tpu.memory_space<vmem>>, %arg2: memref<128x128xbf16, #tpu.memory_space<vmem>>, %arg3: memref<1x128xf32, #tpu.memory_space<vmem>>, %arg4: memref<128x128xbf16, #tpu.memory_space<vmem>>, %arg5: memref<1x128xf32, #tpu.memory_space<vmem>>, %arg6: memref<8x128xbf16, #tpu.memory_space<vmem>>) attributes {dimension_semantics = [#tpu.dimension_semantics<arbitrary>], iteration_bounds = array<i64: 1>, scalar_prefetch = 0 : i64, scratch_operands = 0 : i64, tpu.core_type = #tpu.core_type<tc>, window_params = [{pipeline_mode = #tpu.pipeline_mode<synchronous>, transform_indices = @transform_0, window_bounds = array<i64: 8, 128>}, {pipeline_mode = #tpu.pipeline_mode<synchronous>, transform_indices = @transform_1, window_bounds = array<i64: 128, 128>}, {pipeline_mode = #tpu.pipeline_mode<synchronous>, transform_indices = @transform_2, window_bounds = array<i64: 1, 128>}, {pipeline_mode = #tpu.pipeline_mode<synchronous>, transform_indices = @transform_3, window_bounds = array<i64: 128, 128>}, {pipeline_mode = #tpu.pipeline_mode<synchronous>, transform_indices = @transform_4, window_bounds = array<i64: 1, 128>}, {pipeline_mode = #tpu.pipeline_mode<synchronous>, transform_indices = @transform_5, window_bounds = array<i64: 8, 128>}]} {
    %c0 = arith.constant 0 : index
    %c0_0 = arith.constant 0 : index
    %0 = vector.load %arg1[%c0, %c0_0] : memref<8x128xbf16, #tpu.memory_space<vmem>>, vector<8x128xbf16>
    %c0_1 = arith.constant 0 : index
    %c0_2 = arith.constant 0 : index
    %1 = vector.load %arg2[%c0_1, %c0_2] : memref<128x128xbf16, #tpu.memory_space<vmem>>, vector<128x128xbf16>
    %cst = arith.constant dense<0.000000e+00> : vector<8x128xf32>
    %2 = tpu.matmul %0, %1, %cst {dimension_numbers = #tpu.dot_dimension_numbers<[1], [0], [0], [1], [0, 0, 1, 1], [], []>} : vector<8x128xbf16>, vector<128x128xbf16>, vector<8x128xf32> -> vector<8x128xf32>
    %c0_3 = arith.constant 0 : index
    %c0_4 = arith.constant 0 : index
    %3 = vector.load %arg3[%c0_3, %c0_4] : memref<1x128xf32, #tpu.memory_space<vmem>>, vector<1x128xf32>
    %4 = vector.broadcast %3 : vector<1x128xf32> to vector<8x128xf32>
    %5 = arith.addf %2, %4 : vector<8x128xf32>
    %6 = arith.truncf %5 : vector<8x128xf32> to vector<8x128xbf16>
    %c0_5 = arith.constant 0 : index
    %c0_6 = arith.constant 0 : index
    %7 = vector.load %arg4[%c0_5, %c0_6] : memref<128x128xbf16, #tpu.memory_space<vmem>>, vector<128x128xbf16>
    %cst_7 = arith.constant dense<0.000000e+00> : vector<8x128xf32>
    %8 = tpu.matmul %6, %7, %cst_7 {dimension_numbers = #tpu.dot_dimension_numbers<[1], [0], [0], [1], [0, 0, 1, 1], [], []>} : vector<8x128xbf16>, vector<128x128xbf16>, vector<8x128xf32> -> vector<8x128xf32>
    %c0_8 = arith.constant 0 : index
    %c0_9 = arith.constant 0 : index
    %9 = vector.load %arg5[%c0_8, %c0_9] : memref<1x128xf32, #tpu.memory_space<vmem>>, vector<1x128xf32>
    %10 = vector.broadcast %9 : vector<1x128xf32> to vector<8x128xf32>
    %11 = arith.addf %8, %10 : vector<8x128xf32>
    %12 = arith.truncf %11 : vector<8x128xf32> to vector<8x128xbf16>
    %c0_10 = arith.constant 0 : index
    %c0_11 = arith.constant 0 : index
    %13 = vector.load %arg6[%c0_10, %c0_11] : memref<8x128xbf16, #tpu.memory_space<vmem>>, vector<8x128xbf16>
    tpu.vector_store %arg6[%c0_10, %c0_11], %12 {strides = array<i32>} : memref<8x128xbf16, #tpu.memory_space<vmem>>, vector<8x128xbf16>,
    return
  }
  func.func @transform_0(%arg0: i32) -> (i32, i32) {
    %c0_i32 = arith.constant 0 : i32
    %c0_i32_0 = arith.constant 0 : i32
    %c0_i32_1 = arith.constant 0 : i32
    return %c0_i32, %c0_i32_0 : i32, i32
  }
  func.func @transform_1(%arg0: i32) -> (i32, i32) {
    %c0_i32 = arith.constant 0 : i32
    %c0_i32_0 = arith.constant 0 : i32
    %c0_i32_1 = arith.constant 0 : i32
    return %c0_i32, %c0_i32_0 : i32, i32
  }
  func.func @transform_2(%arg0: i32) -> (i32, i32) {
    %c0_i32 = arith.constant 0 : i32
    %c0_i32_0 = arith.constant 0 : i32
    %c0_i32_1 = arith.constant 0 : i32
    return %c0_i32, %c0_i32_0 : i32, i32
  }
  func.func @transform_3(%arg0: i32) -> (i32, i32) {
    %c0_i32 = arith.constant 0 : i32
    %c0_i32_0 = arith.constant 0 : i32
    %c0_i32_1 = arith.constant 0 : i32
    return %c0_i32, %c0_i32_0 : i32, i32
  }
  func.func @transform_4(%arg0: i32) -> (i32, i32) {
    %c0_i32 = arith.constant 0 : i32
    %c0_i32_0 = arith.constant 0 : i32
    %c0_i32_1 = arith.constant 0 : i32
    return %c0_i32, %c0_i32_0 : i32, i32
  }
  func.func @transform_5(%arg0: i32) -> (i32, i32) {
    %c0_i32 = arith.constant 0 : i32
    %c0_i32_0 = arith.constant 0 : i32
    %c0_i32_1 = arith.constant 0 : i32
    return %c0_i32, %c0_i32_0 : i32, i32
  }
}

</mosaic_0001>

<bundles_post_ra>
// kernel: tpu_custom_call.1
= control target key start
LH: loop header
LB: loop body
LE: loop exit
PB: predicated region body
PF: predicated region fallthrough
CT: control target
= control target key end

     0   :  { %10 = vsyncpa [#allocation3], 0  ;;  %s595_s0 = inlined_call_operand.hbm [shape: bf16[8,128], index: 0, kind: input, shape index: {}]   ;;  %s596_s1 = inlined_call_operand.hbm [shape: bf16[128,128], index: 1, kind: input, shape index: {}]   ;;  %s597_s2 = inlined_call_operand.vmem [shape: f32[1,128], index: 2, kind: input, shape index: {}]   ;;  %s598_s3 = inlined_call_operand.hbm [shape: bf16[128,128], index: 3, kind: input, shape index: {}]   ;;  %s599_s4 = inlined_call_operand.vmem [shape: f32[1,128], index: 4, kind: input, shape index: {}]   ;;  %s600_s5 = inlined_call_operand.hbm [shape: bf16[8,128], index: 5, kind: output, shape index: {}]  }
   0x1   :  { %11 = vsyncpa [#allocation6], 0 }
   0x2   :  { %12 = vsyncpa [#allocation4], 0  ;;  %s497_s18 = smov [#allocation5]   ;;  %s403_s22 = scalar_lea.hbm %s596_s1, 1024 }
   0x3   :  { %s28_s19 = sshll.u32 %s497_s18, 4  ;;  %p404_p0 = scmp.ne.s32.totalorder %s596_s1, %s403_s22  ;;  %s29_s19 = int_to_ptr.vmem [resolvable:$true] %s28_s19 }
   0x4   :  { %p407_p1 = scmp.lt.u32.totalorder %s403_s22, %s596_s1 }
   0x6   :  { %p409_p2 = pnand %p407_p1, %p404_p0 }
   0x8   :  { %412 = shalt.err (!%p409_p2)
}
   0x9   :  { %s413_s27 = scalar_lea.vmem %s29_s19, 1024  ;;  %p418_p4 = scmp.lt.s32.totalorder %s29_s19, %s29_s19 }
   0xa   :  { %p414_p3 = scmp.ne.s32.totalorder %s29_s19, %s413_s27  ;;  %p419_p5 = scmp.lt.s32.totalorder %s413_s27, %s413_s27 }
   0xc   :  { %p420_p6 = por %p419_p5, %p418_p4 }
   0xe   :  { %p421_p7 = pnand %p420_p6, %p414_p3 }
  0x10   :  { %424 = shalt.err (!%p421_p7)
}
  0x11   :  { %s498_s28 = smov 64   ;;  %s499_s29 = smov 4  }
  0x12   :  { %34 = dma.hbm_to_vmem [thread:$0]  %s596_s1, 1024, %s29_s19, [#allocation6], %s498_s28, %s498_s28, %s499_s29  }
  0x13   :  { %s500_s7 = smov [#allocation2]   ;;  %s501_s9 = smov [#allocation7]  }
  0x14   :  { %s19_s8 = sshll.u32 %s500_s7, 4  ;;  %s42_s10 = sshll.u32 %s501_s9, 4  ;;  %s20_s8 = int_to_ptr.vmem [resolvable:$true] %s19_s8  ;;  %s43_s10 = int_to_ptr.vmem [resolvable:$true] %s42_s10 }
  0x15   :  { %s425_s13 = scalar_lea.hbm %s595_s0, 64 }
  0x16   :  { %p426_p8 = scmp.ne.s32.totalorder %s595_s0, %s425_s13  ;;  %p429_p9 = scmp.lt.u32.totalorder %s425_s13, %s595_s0 }
  0x18   :  { %p431_p10 = pnand %p429_p9, %p426_p8 }
  0x1a   :  { %434 = shalt.err (!%p431_p10)
}
  0x1b   :  { %s435_s1 = scalar_lea.vmem %s20_s8, 64  ;;  %p440_p12 = scmp.lt.s32.totalorder %s20_s8, %s20_s8 }
  0x1c   :  { %p436_p11 = scmp.ne.s32.totalorder %s20_s8, %s435_s1  ;;  %p441_p13 = scmp.lt.s32.totalorder %s435_s1, %s435_s1 }
  0x1e   :  { %p442_p0 = por %p441_p13, %p440_p12 }
  0x20   :  { %p443_p1 = pnand %p442_p0, %p436_p11 }
  0x22   :  { %446 = shalt.err (!%p443_p1)
}
  0x23   :  { %22 = dma.hbm_to_vmem [thread:$0]  %s595_s0, 64, %s20_s8, [#allocation3]  }
  0x24   :  { %s447_s22 = scalar_lea.hbm %s598_s3, 1024 }
  0x25   :  { %p448_p2 = scmp.ne.s32.totalorder %s598_s3, %s447_s22  ;;  %p451_p3 = scmp.lt.u32.totalorder %s447_s22, %s598_s3 }
  0x27   :  { %p453_p4 = pnand %p451_p3, %p448_p2 }
  0x29   :  { %456 = shalt.err (!%p453_p4)
}
  0x2a   :  { %s457_s27 = scalar_lea.vmem %s43_s10, 1024  ;;  %p462_p6 = scmp.lt.s32.totalorder %s43_s10, %s43_s10 }
  0x2b   :  { %p458_p5 = scmp.ne.s32.totalorder %s43_s10, %s457_s27  ;;  %p463_p7 = scmp.lt.s32.totalorder %s457_s27, %s457_s27 }
  0x2d   :  { %p464_p8 = por %p463_p7, %p462_p6 }
  0x2f   :  { %p465_p9 = pnand %p464_p8, %p458_p5 }
  0x31   :  { %468 = shalt.err (!%p465_p9)
}
  0x32   :  { %48 = dma.hbm_to_vmem [thread:$0]  %s598_s3, 1024, %s43_s10, [#allocation6], %s498_s28, %s498_s28, %s499_s29  }
  0x33   :  { %491 = dma.done.wait [#allocation3], 64  }
  0x34   :  { %492 = vsyncadd [#allocation3], 4294967232 }
  0x35   :  { %493 = dma.done.wait [#allocation6], 2048  }
  0x36   :  { %494 = vsyncadd [#allocation6], 4294965248  ;;  %v502_v0 = vmov 0.0   ;;  %vm503_vm0 = vmmov 0   ;;  %v387_v1 = vld [vmem:[#allocation5] sm:$0xff]   ;;  %v388_v2 = vld [vmem:[#allocation5 + $0x8] sm:$0xff]  }
  0x37   :  { %339 = vmatprep.subr.bf16.mxu0 %v502_v0  ;;  %355 = vmatprep.mubr.msk.bf16.mxu0 %vm503_vm0, %v502_v0  ;;  %v389_v3 = vld [vmem:[#allocation5 + $0x10] sm:$0xff]   ;;  %v395_v4 = vld [vmem:[#allocation7] sm:$0xff]   ;;  %v390_v5 = vld [vmem:[#allocation5 + $0x18] sm:$0xff]   ;;  %s504_s7 = smov [#allocation8]  }
  0x38   :  { %359 = vmatprep.subr.bf16.mxu1 %v502_v0  ;;  %375 = vmatprep.mubr.msk.bf16.mxu1 %vm503_vm0, %v502_v0  ;;  %v396_v6 = vld [vmem:[#allocation7 + $0x8] sm:$0xff]   ;;  %v391_v7 = vld [vmem:[#allocation5 + $0x20] sm:$0xff]   ;;  %v397_v8 = vld [vmem:[#allocation7 + $0x10] sm:$0xff]   ;;  %s293_s8 = sshll.u32 %s504_s7, 4  ;;  %s294_s8 = int_to_ptr.vmem [resolvable:$true] %s293_s8 }
  0x39   :  { %340 = vmatpush3.bf16.msra.mxu0 %v387_v1  ;;  %360 = vmatpush3.bf16.msra.mxu1 %v395_v4  ;;  %v392_v9 = vld [vmem:[#allocation5 + $0x28] sm:$0xff]   ;;  %v398_v10 = vld [vmem:[#allocation7 + $0x18] sm:$0xff]   ;;  %v393_v11 = vld [vmem:[#allocation5 + $0x30] sm:$0xff]   ;;  %p474_p11 = scmp.lt.s32.totalorder %s294_s8, %s294_s8 }
  0x3a   :  { %341 = vmatprep.subr.bf16.mxu0 %v502_v0  ;;  %361 = vmatprep.subr.bf16.mxu1 %v502_v0  ;;  %v399_v12 = vld [vmem:[#allocation7 + $0x20] sm:$0xff]   ;;  %v394_v13 = vld [vmem:[#allocation5 + $0x38] sm:$0xff]   ;;  %v400_v14 = vld [vmem:[#allocation7 + $0x28] sm:$0xff]  }
  0x3b   :  { %v61_v15 = vld [vmem:[#allocation2] sm:$0xf]  ;;  %v401_v16 = vld [vmem:[#allocation7 + $0x30] sm:$0xff]  }
  0x3c   :  { %v402_v17 = vld [vmem:[#allocation7 + $0x38] sm:$0xff]  }
  0x3d   :  { %342 = vmatpush3.bf16.msra.mxu0 %v388_v2  ;;  %362 = vmatpush3.bf16.msra.mxu1 %v396_v6  ;;  %v303_v18 = vld [vmem:[%s597_s2] ss:$0 sm:$0xff]  ;;  %s469_s2 = scalar_lea.vmem %s294_s8, 64 }
  0x3e   :  { %343 = vmatprep.subr.bf16.mxu0 %v502_v0  ;;  %363 = vmatprep.subr.bf16.mxu1 %v502_v0  ;;  %v312_v25 = vld [vmem:[%s599_s4] ss:$0 sm:$0xff]  ;;  %p470_p10 = scmp.ne.s32.totalorder %s294_s8, %s469_s2  ;;  %p475_p12 = scmp.lt.s32.totalorder %s469_s2, %s469_s2 }
  0x40   :  { %p476_p13 = por %p475_p12, %p474_p11 }
  0x41   :  { %344 = vmatpush3.bf16.msra.mxu0 %v389_v3  ;;  %364 = vmatpush3.bf16.msra.mxu1 %v397_v8 }
  0x42   :  { %345 = vmatprep.subr.bf16.mxu0 %v502_v0  ;;  %365 = vmatprep.subr.bf16.mxu1 %v502_v0  ;;  %p477_p0 = pnand %p476_p13, %p470_p10 }
  0x45   :  { %346 = vmatpush3.bf16.msra.mxu0 %v390_v5  ;;  %366 = vmatpush3.bf16.msra.mxu1 %v398_v10 }
  0x46   :  { %347 = vmatprep.subr.bf16.mxu0 %v502_v0  ;;  %367 = vmatprep.subr.bf16.mxu1 %v502_v0 }
  0x49   :  { %348 = vmatpush3.bf16.msra.mxu0 %v391_v7  ;;  %368 = vmatpush3.bf16.msra.mxu1 %v399_v12 }
  0x4a   :  { %349 = vmatprep.subr.bf16.mxu0 %v502_v0  ;;  %369 = vmatprep.subr.bf16.mxu1 %v502_v0 }
  0x4d   :  { %350 = vmatpush3.bf16.msra.mxu0 %v392_v9  ;;  %370 = vmatpush3.bf16.msra.mxu1 %v400_v14 }
  0x4e   :  { %351 = vmatprep.subr.bf16.mxu0 %v502_v0  ;;  %371 = vmatprep.subr.bf16.mxu1 %v502_v0 }
  0x51   :  { %352 = vmatpush3.bf16.msra.mxu0 %v393_v11  ;;  %372 = vmatpush3.bf16.msra.mxu1 %v401_v16 }
  0x52   :  { %353 = vmatprep.subr.bf16.mxu0 %v502_v0  ;;  %373 = vmatprep.subr.bf16.mxu1 %v502_v0 }
  0x55   :  { %354 = vmatpush3.bf16.msra.mxu0 %v394_v13  ;;  %374 = vmatpush3.bf16.msra.mxu1 %v402_v17 }
  0x58   :  { %356 = vmatmul.mubr.bf16.vlgmr.msra.gmra.mrb[0].mxu0 %v61_v15 }
 0x12b   :  { %v167_v19 = vpop.f32.mrb[0].mxu0 }
 0x12c   :  { %v168_v20 = vadd.f32 %v303_v18, %v167_v19  ;;  %v357_v21 = vpop.f32.mrb[1].mxu0 }
 0x12d   :  { %v170_v22 = vpop.f32.mrb[2].mxu0 }
 0x12e   :  { %v173_v23 = vpack.c.bf16 %v168_v20, %v168_v20  ;;  %v358_v24 = vpop.f32.mrb[3].mxu0 }
 0x130   :  { %376 = vmatmul.mubr.bf16.vlgmr.msra.gmra.mrb[0].mxu1 %v173_v23 }
 0x203   :  { %v279_v26 = vpop.f32.mrb[0].mxu1 }
 0x204   :  { %v280_v27 = vadd.f32 %v312_v25, %v279_v26  ;;  %v377_v28 = vpop.f32.mrb[1].mxu1 }
 0x205   :  { %v282_v29 = vpop.f32.mrb[2].mxu1 }
 0x206   :  { %v285_v30 = vpack.c.bf16 %v280_v27, %v280_v27  ;;  %v378_v31 = vpop.f32.mrb[3].mxu1 }
 0x208   :  { %286 = vst [vmem:[#allocation8] sm:$0xf] %v285_v30 }
 0x209   :  { %480 = shalt.err (!%p477_p0)
}
 0x20a   :  { %s481_s4 = scalar_lea.hbm %s600_s5, 64 }
 0x20b   :  { %p482_p1 = scmp.ne.s32.totalorder %s600_s5, %s481_s4  ;;  %p485_p2 = scmp.lt.u32.totalorder %s481_s4, %s600_s5 }
 0x20d   :  { %p487_p3 = pnand %p485_p2, %p482_p1 }
 0x20f   :  { %490 = shalt.err (!%p487_p3)
}
 0x210   :  { %296 = dma.vmem_to_hbm [thread:$0]  %s294_s8, 64, %s600_s5, [#allocation4]  }
 0x211   :  { %495 = dma.done.wait [#allocation4], 64  }
 0x212   :  { %496 = vsyncadd [#allocation4], 4294967232 }
 0x213   :  { %300 = vsyncpa [#allocation3], 1 }
 0x214   :  { %301 = vsyncpa [#allocation6], 1 }
 0x215   :  { %302 = vsyncpa [#allocation4], 1 }

</bundles_post_ra>
